<compile_context>
chip_gen: v7x
topology: tpu7x:2x2x1
jax: 0.10.0
libtpu: 0.0.40
codegen_flags: <defaults>
</compile_context>

<pallas_src>
import jax
import jax.numpy as jnp
import numpy as np
from jax.experimental import pallas as pl
from jax.experimental.pallas import tpu as pltpu

# Model sizes (small, consistent with the module's forward semantics)
B = 2          # batch
L = 16         # sequence length
C_IN = 4       # input channels (last dim of the PyTorch input)
HIDDEN = 32    # backbone feature width
N_CLASSES = 8  # classifier output
K = 3          # conv kernel size (padding = 1, 'same')
BL = B * L

# Packed-slab layout (rows; all sections start 8-aligned, width = 128 lanes)
W0_ROW = 0          # tap k=0 conv weight  [C_IN, HIDDEN] at cols 0..HIDDEN-1
W1_ROW = 8          # tap k=1
W2_ROW = 16         # tap k=2
BCONV_ROW = 24      # conv bias   [1, HIDDEN]
BFC_ROW = 25        # fc bias     [1, N_CLASSES] (rest of the 128 lanes zero)
POOL_ROW = 32       # pooling matrix, padded to [8, BL]; rows B..7 zero
WFC_ROW = 40        # fc weight   [HIDDEN, N_CLASSES] (rest of lanes zero)
SLAB_ROWS = WFC_ROW + HIDDEN            # 72
OUT_ROWS, OUT_LANES = 8, 128            # lane-dense output block


def pack_params(w_conv_t, b_conv_t, w_fc_t, b_fc_t):
    """Pack all parameters + constants into one padded f32 slab (built once).

    Accepts PyTorch state_dict layouts:
      w_conv_t: [HIDDEN, C_IN, K]   (nn.Conv1d.weight)
      b_conv_t: [HIDDEN]
      w_fc_t:   [N_CLASSES, HIDDEN] (nn.Linear.weight)
      b_fc_t:   [N_CLASSES]
    """
    w_conv = np.transpose(np.asarray(w_conv_t, np.float32), (2, 1, 0))  # [K, C_IN, H]
    b_conv = np.asarray(b_conv_t, np.float32).reshape(-1)               # [H]
    w_fc = np.asarray(w_fc_t, np.float32).T                             # [H, N]
    b_fc = np.asarray(b_fc_t, np.float32).reshape(-1)                   # [N]

    slab = np.zeros((SLAB_ROWS, 128), np.float32)
    for k, row in enumerate((W0_ROW, W1_ROW, W2_ROW)):
        slab[row:row + C_IN, :HIDDEN] = w_conv[k]
    slab[BCONV_ROW, :HIDDEN] = b_conv
    slab[BFC_ROW, :N_CLASSES] = b_fc
    for b in range(B):                       # mean-pool matrix: P[b, r] = 1/L
        slab[POOL_ROW + b, b * L:(b + 1) * L] = 1.0 / L
    slab[WFC_ROW:WFC_ROW + HIDDEN, :N_CLASSES] = w_fc
    return jnp.asarray(slab)


def complete_model_kernel(x_ref, slab_ref, out_ref):
    """Single gridless invocation: whole batch per call.

    x_ref:    [B*L, C_IN]        (batch*seq on sublanes, channels on lanes)
    slab_ref: [SLAB_ROWS, 128]   packed weights / biases / pooling matrix
    out_ref:  [8, 128]           lane-dense logits block (valid [:B, :N_CLASSES])
    """
    x = x_ref[...]                                           # [B*L, C_IN]
    slab = slab_ref[...]                                     # [SLAB_ROWS, 128]

    w0 = slab[W0_ROW:W0_ROW + C_IN, :HIDDEN]                 # [C_IN, HIDDEN]
    w1 = slab[W1_ROW:W1_ROW + C_IN, :HIDDEN]
    w2 = slab[W2_ROW:W2_ROW + C_IN, :HIDDEN]
    b_conv = slab[BCONV_ROW:BCONV_ROW + 1, :HIDDEN]          # [1, HIDDEN]
    b_fc = slab[BFC_ROW:BFC_ROW + 1, :]                      # [1, 128]
    pool = slab[POOL_ROW:POOL_ROW + OUT_ROWS, :BL]           # [8, B*L]
    w_fc = slab[WFC_ROW:WFC_ROW + HIDDEN, :]                 # [HIDDEN, 128]

    # 'same'-padding taps via sublane roll + mask on the small input.
    # Masks zero the padding rows AND cross-batch wraparound.
    t = jax.lax.broadcasted_iota(jnp.int32, (BL, 1), 0) % L
    x_prev = jnp.where(t >= 1, pltpu.roll(x, 1, axis=0), 0.0)       # x[r-1]
    x_next = jnp.where(t <= L - 2, pltpu.roll(x, BL - 1, axis=0), 0.0)  # x[r+1]

    # Conv1d as three accumulated MXU dots (no lane-axis concat).
    conv = (jnp.dot(x_prev, w0, preferred_element_type=jnp.float32)
            + jnp.dot(x, w1, preferred_element_type=jnp.float32)
            + jnp.dot(x_next, w2, preferred_element_type=jnp.float32))
    conv = jnp.maximum(conv + b_conv, 0.0)                   # bias + ReLU, [B*L, HIDDEN]

    # Global average pool over the sequence via the (otherwise idle) MXU,
    # padded to 8 output rows so the final store is a full (8,128) vreg.
    feat = jnp.dot(pool, conv, preferred_element_type=jnp.float32)   # [8, HIDDEN]

    # Dropout(p=0.5): identity in eval mode.
    # TODO(synk): train-mode dropout would use pltpu.prng_seed / prng_random_bits.

    # Classifier: Linear(HIDDEN -> N_CLASSES), weight padded to 128 lanes.
    logits = jnp.dot(feat, w_fc, preferred_element_type=jnp.float32) + b_fc  # [8, 128]
    out_ref[...] = logits                                    # single unmasked store


def complete_model(x, slab):
    """x: [B, L, C_IN], slab from pack_params() -> logits [B, N_CLASSES]."""
    x2d = x.reshape(BL, C_IN).astype(jnp.float32)            # free layout fold

    out = pl.pallas_call(
        complete_model_kernel,
        out_shape=jax.ShapeDtypeStruct((OUT_ROWS, OUT_LANES), jnp.float32),
        in_specs=[
            pl.BlockSpec(memory_space=pltpu.MemorySpace.VMEM),   # x2d
            pl.BlockSpec(memory_space=pltpu.MemorySpace.VMEM),   # packed slab
        ],
        out_specs=pl.BlockSpec(memory_space=pltpu.MemorySpace.VMEM),
    )(x2d, slab)

    return out[:B, :N_CLASSES]


def reference(x, w_conv_t, b_conv_t, w_fc_t, b_fc_t):
    """Pure-JAX reference matching the PyTorch forward (eval mode),
    taking torch state_dict layouts."""
    w_conv = jnp.transpose(w_conv_t, (2, 1, 0))              # [K, C_IN, HIDDEN]
    w_fc = w_fc_t.T                                          # [HIDDEN, N_CLASSES]
    xp = jnp.pad(x, ((0, 0), (1, 1), (0, 0)))                # [B, L+2, C]
    conv = jnp.zeros((B, L, HIDDEN), jnp.float32)
    for k in range(K):
        conv = conv + jnp.einsum('blc,ch->blh', xp[:, k:k + L, :], w_conv[k])
    conv = jnp.maximum(conv + b_conv_t[None, None, :], 0.0)
    feat = jnp.mean(conv, axis=1)                            # [B, HIDDEN]
    return feat @ w_fc + b_fc_t[None, :]                     # [B, N_CLASSES]


if __name__ == "__main__":
    key = jax.random.PRNGKey(0)
    k1, k2, k3, k4, kx = jax.random.split(key, 5)

    # PyTorch state_dict layouts.
    w_conv_t = jax.random.normal(k1, (HIDDEN, C_IN, K), jnp.float32) * 0.1   # Conv1d.weight
    b_conv_t = jax.random.normal(k2, (HIDDEN,), jnp.float32) * 0.1           # Conv1d.bias
    w_fc_t = jax.random.normal(k3, (N_CLASSES, HIDDEN), jnp.float32) * 0.1   # Linear.weight
    b_fc_t = jax.random.normal(k4, (N_CLASSES,), jnp.float32) * 0.1          # Linear.bias
    x = jax.random.normal(kx, (B, L, C_IN), jnp.float32)

    slab = pack_params(w_conv_t, b_conv_t, w_fc_t, b_fc_t)   # built once

    out = jax.block_until_ready(complete_model(x, slab))
    ref = jax.block_until_ready(reference(x, w_conv_t, b_conv_t, w_fc_t, b_fc_t))

    assert out.shape == (B, N_CLASSES)
    assert np.allclose(np.asarray(out), np.asarray(ref), rtol=1e-4, atol=1e-4)

    print("KERNEL_OK")
</pallas_src>

<mosaic_0001>
module attributes {stable_mosaic.version = 11 : i64} {
  func.func @complete_model_kernel(%arg0: memref<32x4xf32, #tpu.memory_space<vmem>>, %arg1: memref<72x128xf32, #tpu.memory_space<vmem>>, %arg2: memref<8x128xf32, #tpu.memory_space<vmem>>) attributes {dimension_semantics = [], scalar_prefetch = 0 : i64, scratch_operands = 0 : i64, tpu.core_type = #tpu.core_type<tc>} {
    %c0 = arith.constant 0 : index
    %c0_0 = arith.constant 0 : index
    %0 = vector.load %arg0[%c0, %c0_0] : memref<32x4xf32, #tpu.memory_space<vmem>>, vector<32x4xf32>
    %c0_1 = arith.constant 0 : index
    %c0_2 = arith.constant 0 : index
    %1 = vector.load %arg1[%c0_1, %c0_2] : memref<72x128xf32, #tpu.memory_space<vmem>>, vector<72x128xf32>
    %2 = vector.extract_strided_slice %1 {offsets = [0, 0], sizes = [4, 32], strides = [1, 1]} : vector<72x128xf32> to vector<4x32xf32>
    %3 = vector.extract_strided_slice %1 {offsets = [8, 0], sizes = [4, 32], strides = [1, 1]} : vector<72x128xf32> to vector<4x32xf32>
    %4 = vector.extract_strided_slice %1 {offsets = [16, 0], sizes = [4, 32], strides = [1, 1]} : vector<72x128xf32> to vector<4x32xf32>
    %5 = vector.extract_strided_slice %1 {offsets = [24, 0], sizes = [1, 32], strides = [1, 1]} : vector<72x128xf32> to vector<1x32xf32>
    %6 = vector.extract_strided_slice %1 {offsets = [25, 0], sizes = [1, 128], strides = [1, 1]} : vector<72x128xf32> to vector<1x128xf32>
    %7 = vector.extract_strided_slice %1 {offsets = [32, 0], sizes = [8, 32], strides = [1, 1]} : vector<72x128xf32> to vector<8x32xf32>
    %8 = vector.extract_strided_slice %1 {offsets = [40, 0], sizes = [32, 128], strides = [1, 1]} : vector<72x128xf32> to vector<32x128xf32>
    %9 = tpu.iota {dimensions = array<i32: 0>} : vector<32x1xi32>
    %c16_i32 = arith.constant 16 : i32
    %c0_i32 = arith.constant 0 : i32
    %10 = arith.cmpi eq, %c16_i32, %c0_i32 : i32
    %c1_i32 = arith.constant 1 : i32
    %11 = arith.select %10, %c1_i32, %c16_i32 : i32
    %12 = vector.broadcast %11 : i32 to vector<32x1xi32>
    %13 = arith.remsi %9, %12 : vector<32x1xi32>
    %c0_i32_3 = arith.constant 0 : i32
    %14 = vector.broadcast %c0_i32_3 : i32 to vector<32x1xi32>
    %15 = arith.cmpi ne, %13, %14 : vector<32x1xi32>
    %c0_i32_4 = arith.constant 0 : i32
    %16 = vector.broadcast %c0_i32_4 : i32 to vector<32x1xi32>
    %17 = arith.cmpi slt, %13, %16 : vector<32x1xi32>
    %c0_i32_5 = arith.constant 0 : i32
    %18 = arith.cmpi slt, %11, %c0_i32_5 : i32
    %19 = vector.broadcast %18 : i1 to vector<32x1xi1>
    %20 = vector.broadcast %19 : vector<32x1xi1> to vector<32x1xi1>
    %21 = arith.xori %17, %20 : vector<32x1xi1>
    %22 = arith.andi %21, %15 : vector<32x1xi1>
    %23 = vector.broadcast %11 : i32 to vector<32x1xi32>
    %24 = arith.addi %13, %23 : vector<32x1xi32>
    %25 = arith.select %22, %24, %13 : vector<32x1xi1>, vector<32x1xi32>
    %c1_i32_6 = arith.constant 1 : i32
    %26 = vector.broadcast %c1_i32_6 : i32 to vector<32x1xi32>
    %27 = arith.cmpi sge, %25, %26 : vector<32x1xi32>
    %c1_i32_7 = arith.constant 1 : i32
    %28 = tpu.dynamic_rotate %0 by %c1_i32_7 dim 0 : vector<32x4xf32>, i32 -> vector<32x4xf32>
    %cst = arith.constant 0.000000e+00 : f32
    %29 = vector.shape_cast %27 : vector<32x1xi1> to vector<32x1xi1>
    %30 = vector.broadcast %29 : vector<32x1xi1> to vector<32x4xi1>
    %31 = vector.broadcast %cst : f32 to vector<32x4xf32>
    %32 = arith.select %30, %28, %31 : vector<32x4xi1>, vector<32x4xf32>
    %c14_i32 = arith.constant 14 : i32
    %33 = vector.broadcast %c14_i32 : i32 to vector<32x1xi32>
    %34 = arith.cmpi sle, %25, %33 : vector<32x1xi32>
    %c31_i32 = arith.constant 31 : i32
    %35 = tpu.dynamic_rotate %0 by %c31_i32 dim 0 : vector<32x4xf32>, i32 -> vector<32x4xf32>
    %cst_8 = arith.constant 0.000000e+00 : f32
    %36 = vector.shape_cast %34 : vector<32x1xi1> to vector<32x1xi1>
    %37 = vector.broadcast %36 : vector<32x1xi1> to vector<32x4xi1>
    %38 = vector.broadcast %cst_8 : f32 to vector<32x4xf32>
    %39 = arith.select %37, %35, %38 : vector<32x4xi1>, vector<32x4xf32>
    %cst_9 = arith.constant dense<0.000000e+00> : vector<32x32xf32>
    %40 = tpu.matmul %32, %2, %cst_9 {dimension_numbers = #tpu.dot_dimension_numbers<[1], [0], [0], [1], [0, 0, 1, 1], [], []>} : vector<32x4xf32>, vector<4x32xf32>, vector<32x32xf32> -> vector<32x32xf32>
    %cst_10 = arith.constant dense<0.000000e+00> : vector<32x32xf32>
    %41 = tpu.matmul %0, %3, %cst_10 {dimension_numbers = #tpu.dot_dimension_numbers<[1], [0], [0], [1], [0, 0, 1, 1], [], []>} : vector<32x4xf32>, vector<4x32xf32>, vector<32x32xf32> -> vector<32x32xf32>
    %42 = arith.addf %40, %41 : vector<32x32xf32>
    %cst_11 = arith.constant dense<0.000000e+00> : vector<32x32xf32>
    %43 = tpu.matmul %39, %4, %cst_11 {dimension_numbers = #tpu.dot_dimension_numbers<[1], [0], [0], [1], [0, 0, 1, 1], [], []>} : vector<32x4xf32>, vector<4x32xf32>, vector<32x32xf32> -> vector<32x32xf32>
    %44 = arith.addf %42, %43 : vector<32x32xf32>
    %45 = vector.broadcast %5 : vector<1x32xf32> to vector<32x32xf32>
    %46 = arith.addf %44, %45 : vector<32x32xf32>
    %cst_12 = arith.constant 0.000000e+00 : f32
    %47 = vector.broadcast %cst_12 : f32 to vector<32x32xf32>
    %48 = arith.maximumf %46, %47 : vector<32x32xf32>
    %cst_13 = arith.constant dense<0.000000e+00> : vector<8x32xf32>
    %49 = tpu.matmul %7, %48, %cst_13 {dimension_numbers = #tpu.dot_dimension_numbers<[1], [0], [0], [1], [0, 0, 1, 1], [], []>} : vector<8x32xf32>, vector<32x32xf32>, vector<8x32xf32> -> vector<8x32xf32>
    %cst_14 = arith.constant dense<0.000000e+00> : vector<8x128xf32>
    %50 = tpu.matmul %49, %8, %cst_14 {dimension_numbers = #tpu.dot_dimension_numbers<[1], [0], [0], [1], [0, 0, 1, 1], [], []>} : vector<8x32xf32>, vector<32x128xf32>, vector<8x128xf32> -> vector<8x128xf32>
    %51 = vector.broadcast %6 : vector<1x128xf32> to vector<8x128xf32>
    %52 = arith.addf %50, %51 : vector<8x128xf32>
    %c0_15 = arith.constant 0 : index
    %c0_16 = arith.constant 0 : index
    %53 = vector.load %arg2[%c0_15, %c0_16] : memref<8x128xf32, #tpu.memory_space<vmem>>, vector<8x128xf32>
    tpu.vector_store %arg2[%c0_15, %c0_16], %52 {strides = array<i32>} : memref<8x128xf32, #tpu.memory_space<vmem>>, vector<8x128xf32>,
    return
  }
}

</mosaic_0001>

<bundles_post_ra>
// kernel: tpu_custom_call.1
= control target key start
LH: loop header
LB: loop body
LE: loop exit
PB: predicated region body
PF: predicated region fallthrough
CT: control target
= control target key end

     0   :  { %7 = vsyncpa [#allocation3], 0  ;;  %s906_s0 = inlined_call_operand.vmem [shape: f32[32,4], index: 0, kind: input, shape index: {}]   ;;  %s907_s1 = inlined_call_operand.hbm [shape: f32[72,128], index: 1, kind: input, shape index: {}]   ;;  %s908_s2 = inlined_call_operand.hbm [shape: f32[8,128], index: 2, kind: output, shape index: {}]  }
   0x1   :  { %8 = vsyncpa [#allocation4], 0  ;;  %s790_s9 = smov [#allocation2]   ;;  %s742_s13 = scalar_lea.hbm %s907_s1, 1152 }
   0x2   :  { %s16_s10 = sshll.u32 %s790_s9, 4  ;;  %p743_p0 = scmp.ne.s32.totalorder %s907_s1, %s742_s13  ;;  %s17_s10 = int_to_ptr.vmem [resolvable:$true] %s16_s10 }
   0x3   :  { %p746_p1 = scmp.lt.u32.totalorder %s742_s13, %s907_s1 }
   0x5   :  { %p748_p2 = pnand %p746_p1, %p743_p0 }
   0x7   :  { %751 = shalt.err (!%p748_p2)
}
   0x8   :  { %s752_s18 = scalar_lea.vmem %s17_s10, 1152  ;;  %p757_p4 = scmp.lt.s32.totalorder %s17_s10, %s17_s10 }
   0x9   :  { %p753_p3 = scmp.ne.s32.totalorder %s17_s10, %s752_s18  ;;  %p758_p5 = scmp.lt.s32.totalorder %s752_s18, %s752_s18 }
   0xb   :  { %p759_p6 = por %p758_p5, %p757_p4 }
   0xd   :  { %p760_p7 = pnand %p759_p6, %p753_p3 }
   0xf   :  { %763 = shalt.err (!%p760_p7)
}
  0x10   :  { %s791_s19 = smov 128   ;;  %s792_s20 = smov 8  }
  0x11   :  { %22 = dma.hbm_to_vmem [thread:$0]  %s907_s1, 1152, %s17_s10, [#allocation3], %s791_s19, %s791_s19, %s792_s20  }
  0x12   :  { %786 = dma.done.wait [#allocation3], 1152  }
  0x13   :  { %787 = vsyncadd [#allocation3], 4294966144  ;;  %v39_v0 = vlaneseq  ;;  %vm155_vm0 = vcmask 1043456   ;;  %v30_v6 = vld [vmem:[#allocation2] sm:$0xff]  ;;  %v29_v8 = vld [vmem:[%s906_s0 + $0x18] sm:$0xff]  ;;  %vm142_vm2 = vcmask 31744  }
  0x14   :  { %v26_v7 = vld [vmem:[%s906_s0] sm:$0xff]  ;;  %677 = vmatprep.subr.msk.mxu0 %vm155_vm0, %v30_v6  ;;  %v99_v11 = vrot.slane %v29_v8, 7  ;;  %v27_v12 = vld [vmem:[%s906_s0 + $0x8] sm:$0xff]  ;;  %v32_v13 = vld [vmem:[#allocation2 + $0x10] sm:$0xff]  ;;  %v124_v33 = vrot.slane %v29_v8, 1  ;;  %v793_v38 = vmov 0.0|0.0  }
  0x15   :  { %v824_v1 = vshrl.u32 %v39_v0, 7  ;;  %v96_v10 = vrot.slane %v26_v7, 7  ;;  %v28_v14 = vld [vmem:[%s906_s0 + $0x10] sm:$0xff]  ;;  %671 = vmatprep.mubr.msk.f32.mxu1 %vm142_vm2, %v26_v7  ;;  %678 = vmatpush3.msk.msra.mxu0 %vm155_vm0, %v30_v6  ;;  %v97_v15 = vrot.slane %v27_v12, 7  ;;  %v31_v18 = vld [vmem:[#allocation2 + $0x8] sm:$0xff]  ;;  %v121_v22 = vrot.slane %v26_v7, 1 }
  0x16   :  { %v98_v17 = vrot.slane %v28_v14, 7  ;;  %685 = vmatprep.subr.msk.mxu0 %vm155_vm0, %v32_v13  ;;  %v123_v21 = vrot.slane %v28_v14, 1  ;;  %669 = vmatprep.subr.msk.mxu1 %vm155_vm0, %v31_v18  ;;  %v122_v27 = vrot.slane %v27_v12, 1  ;;  %vm794_vm8 = vmmov 0   ;;  %v33_v44 = vld [vmem:[#allocation2 + $0x18] sm:$0xff]  ;;  %v35_v0 = vld [vmem:[#allocation2 + $0x28] sm:$0xff] }
  0x17   :  { %v48_v2 = vand.u32 15, %v824_v1  ;;  %v42_v3 = vadd.s32 16, %v824_v1  ;;  %v41_v5 = vadd.s32 8, %v824_v1  ;;  %vm100_vm1 = vcmp.lt.s32.totalorder %v824_v1, 1  ;;  %670 = vmatpush3.msk.msra.mxu1 %vm155_vm0, %v31_v18  ;;  %v37_v6 = vld [vmem:[#allocation2 + $0x38] sm:$0xff]  ;;  %v38_v7 = vld [vmem:[#allocation2 + $0x40] sm:$0xff] }
  0x18   :  { %v43_v19 = vadd.s32 24, %v824_v1  ;;  %v104_v20 = vsel %vm100_vm1, %v99_v11, %v96_v10  ;;  %v103_v25 = vsel %vm100_vm1, %v96_v10, %v97_v15  ;;  %v102_v26 = vsel %vm100_vm1, %v97_v15, %v98_v17  ;;  %672 = vmatmul.mubr.msk.f32.vlgmr.msra.gmra.mrb[0].mxu1 %vm142_vm2, %v27_v12  ;;  %715 = vmatprep.subr.bf16.mxu1 %v793_v38  ;;  %s796_s0 = smov [#allocation5]  }
  0x19   :  { %v62_v4 = vand.u32 15, %v42_v3  ;;  %vm837_vm3 = vcmp.ge.s32.totalorder %v48_v2, 1  ;;  %v55_v23 = vand.u32 15, %v41_v5  ;;  %vm125_vm5 = vcmp.lt.s32.totalorder %v824_v1, 7  ;;  %674 = vmatprep.mubr.msk.f32.mxu1 %vm142_vm2, %v28_v14  ;;  %v36_v2 = vld [vmem:[#allocation2 + $0x30] sm:$0xff]  ;;  %s618_s30 = sshll.u32 %s796_s0, 4  ;;  %s619_s30 = int_to_ptr.vmem [resolvable:$true] %s618_s30 }
  0x1a   :  { %v113_v24 = vsel %vm837_vm3, %v104_v20, 0.0  ;;  %v101_v29 = vsel %vm100_vm1, %v98_v17, %v99_v11  ;;  %v69_v30 = vand.u32 15, %v43_v19  ;;  %v128_v31 = vsel %vm125_vm5, %v121_v22, %v122_v27  ;;  %s764_s3 = scalar_lea.vmem %s619_s30, 128  ;;  %p769_p9 = scmp.lt.s32.totalorder %s619_s30, %s619_s30 }
  0x1b   :  { %vm849_vm4 = vcmp.ge.s32.totalorder %v62_v4, 1  ;;  %679 = vmatprep.mubr.msk.f32.mxu0 %vm142_vm2, %v113_v24  ;;  %vm118_vm6 = vcmp.le.s32.totalorder %v55_v23, 14  ;;  %v127_v32 = vsel %vm125_vm5, %v122_v27, %v123_v21  ;;  %v126_v35 = vsel %vm125_vm5, %v123_v21, %v124_v33  ;;  %v34_v4 = vld [vmem:[#allocation2 + $0x20] sm:$0xff]  ;;  %p765_p8 = scmp.ne.s32.totalorder %s619_s30, %s764_s3  ;;  %p770_p10 = scmp.lt.s32.totalorder %s764_s3, %s764_s3 }
  0x1c   :  { %v115_v28 = vsel %vm849_vm4, %v102_v26, 0.0  ;;  %680 = vmatmul.mubr.msk.f32.vlgmr.msra.gmra.mrb[0].mxu0 %vm142_vm2, %v103_v25  ;;  %675 = vmatmul.mubr.msk.f32.gmra.mrb[2].mxu1 %vm142_vm2, %v29_v8  ;;  %v139_v34 = vsel %vm118_vm6, %v127_v32, 0.0  ;;  %vm120_vm7 = vcmp.le.s32.totalorder %v69_v30, 14  ;;  %v129_v36 = vsel %vm125_vm5, %v124_v33, %v121_v22 }
  0x1d   :  { %686 = vmatpush3.msk.msra.mxu0 %vm155_vm0, %v32_v13  ;;  %682 = vmatprep.mubr.msk.f32.mxu0 %vm142_vm2, %v115_v28  ;;  %v141_v37 = vsel %vm120_vm7, %v129_v36, 0.0  ;;  %v795_v39 = vmov 0.0   ;;  %v450_v42 = vsub.s32 0, %v824_v1  ;;  %vm460_vm9 = vcmask 261120   ;;  %p771_p11 = por %p770_p10, %p769_p9 }
  0x1e   :  { %701 = vmatprep.mubr.msk.f32.mxu1 %vm794_vm8, %v795_v39  ;;  %v722_v5 = vpack.c.bf16 %v36_v2, %v35_v0  ;;  %v725_v8 = vpack.c.bf16 %v38_v7, %v37_v6  ;;  %v536_v11 = vsub.s32 1, %v824_v1 }
  0x1f   :  { %v451_v46 = vrot.slane %v33_v44, %v450_v42  ;;  %p772_p12 = pnand %p771_p11, %p765_p8 }
  0x20   :  { %683 = vmatmul.mubr.msk.f32.gmra.mrb[2].mxu0 %vm142_vm2, %v101_v29  ;;  %v537_v12 = vrot.slane %v33_v44, %v536_v11 }
  0x21   :  { %687 = vmatprep.mubr.msk.f32.mxu0 %vm142_vm2, %v128_v31 }
  0x24   :  { %688 = vmatmul.mubr.msk.f32.vlgmr.msra.gmra.mrb[0].mxu0 %vm142_vm2, %v139_v34 }
  0x25   :  { %690 = vmatprep.mubr.msk.f32.mxu0 %vm142_vm2, %v126_v35 }
  0x28   :  { %691 = vmatmul.mubr.msk.f32.gmra.mrb[2].mxu0 %vm142_vm2, %v141_v37 }
  0xeb   :  { %v673_v40 = vpop.f32.mrb[0].mxu1 }
  0xec   :  { %v225_v41 = vpop.f32.mrb[1].mxu1 }
  0xef   :  { %v676_v43 = vpop.f32.mrb[2].mxu1 }
  0xf0   :  { %v235_v45 = vpop.f32.mrb[3].mxu1 }
  0xf7   :  { %v689_v47 = vpop.f32.mrb[0].mxu0 }
  0xf8   :  { %v727_v48 = vadd.f32 %v689_v47, %v673_v40  ;;  %v425_v49 = vpop.f32.mrb[1].mxu0 }
  0xf9   :  { %v728_v50 = vadd.f32 %v425_v49, %v225_v41 }
  0xfa   :  { %v453_v51 = vadd.f32 %v727_v48, %v451_v46 }
  0xfb   :  { %v452_v52 = vadd.f32 %v728_v50, %v451_v46  ;;  %v692_v53 = vpop.f32.mrb[2].mxu0 }
  0xfc   :  { %v457_v54 = vmax.f32 %v453_v51, 0.0  ;;  %v729_v55 = vadd.f32 %v692_v53, %v676_v43  ;;  %v435_v56 = vpop.f32.mrb[3].mxu0 }
  0xfd   :  { %v456_v57 = vmax.f32 %v452_v52, 0.0  ;;  %v730_v58 = vadd.f32 %v435_v56, %v235_v45 }
  0xfe   :  { %v455_v59 = vadd.f32 %v729_v55, %v451_v46 }
  0xff   :  { %v716_v60 = vpack.c.bf16 %v457_v54, %v456_v57  ;;  %v454_v61 = vadd.f32 %v730_v58, %v451_v46 }
 0x100   :  { %v459_v62 = vmax.f32 %v455_v59, 0.0 }
 0x101   :  { %v458_v63 = vmax.f32 %v454_v61, 0.0  ;;  %717 = vmatpush3.bf16.msra.mxu1 %v716_v60 }
 0x102   :  { %718 = vmatprep.subr.bf16.mxu1 %v793_v38 }
 0x103   :  { %v719_v3 = vpack.c.bf16 %v459_v62, %v458_v63 }
 0x105   :  { %720 = vmatpush3.bf16.msra.mxu1 %v719_v3 }
 0x106   :  { %721 = vmatprep.subr.bf16.mxu1 %v793_v38 }
 0x108   :  { %702 = vmatmul.mubr.msk.f32.vlgmr.msra.gmra.mrb[4].mxu1 %vm460_vm9, %v34_v4 }
 0x109   :  { %723 = vmatpush3.bf16.msra.mxu1 %v722_v5  ;;  %712 = vmatprep.mubr.msk.f32.mxu1 %vm794_vm8, %v795_v39 }
 0x10a   :  { %724 = vmatprep.subr.bf16.mxu1 %v793_v38 }
 0x10d   :  { %726 = vmatpush3.bf16.msra.mxu1 %v725_v8 }
 0x1db   :  { %v530_v9 = vpop.f32.mrb[4].mxu1 }
 0x1dc   :  { %v703_v10 = vpop.f32.mrb[5].mxu1  ;;  %713 = vmatmul.mubr.msk.f32.vlgmr.msra.gmra.mrb[6].mxu1 %vm460_vm9, %v530_v9 }
 0x2af   :  { %v607_v13 = vpop.f32.mrb[6].mxu1 }
 0x2b0   :  { %v608_v14 = vadd.f32 %v607_v13, %v537_v12  ;;  %v714_v15 = vpop.f32.mrb[7].mxu1 }
 0x2b2   :  { %611 = vst [vmem:[#allocation5] sm:$0xff] %v608_v14 }
 0x2b3   :  { %775 = shalt.err (!%p772_p12)
}
 0x2b4   :  { %s776_s6 = scalar_lea.hbm %s908_s2, 128 }
 0x2b5   :  { %p777_p13 = scmp.ne.s32.totalorder %s908_s2, %s776_s6  ;;  %p780_p0 = scmp.lt.u32.totalorder %s776_s6, %s908_s2 }
 0x2b7   :  { %p782_p1 = pnand %p780_p0, %p777_p13 }
 0x2b9   :  { %785 = shalt.err (!%p782_p1)
}
 0x2ba   :  { %621 = dma.vmem_to_hbm [thread:$0]  %s619_s30, 128, %s908_s2, [#allocation4]  }
 0x2bb   :  { %788 = dma.done.wait [#allocation4], 128  }
 0x2bc   :  { %789 = vsyncadd [#allocation4], 4294967168 }
 0x2bd   :  { %625 = vsyncpa [#allocation3], 1 }
 0x2be   :  { %626 = vsyncpa [#allocation4], 1 }

</bundles_post_ra>
